<compile_context>
chip_gen: v7x
topology: tpu7x:2x2x1
jax: 0.10.0
libtpu: 0.0.40
codegen_flags: <defaults>
</compile_context>

<pallas_src>
import math
import functools

import jax
import jax.numpy as jnp
from jax.experimental import pallas as pl
from jax.experimental.pallas import tpu as pltpu


# ----------------------------------------------------------------------------
# padding helpers (host side)
# ----------------------------------------------------------------------------
def _round_up(x, m):
    return ((x + m - 1) // m) * m


def _pad2(a, rows, cols):
    r, c = a.shape
    return jnp.pad(a, ((0, rows - r), (0, cols - c)))


def _pad_weight(w, feat, feat_p, variant):
    """Zero-pad weight so it matches the lane-padded feature layout."""
    f_out = w.shape[1]
    if variant:
        wp = jnp.zeros((2 * feat_p, feat_p), w.dtype)
        wp = wp.at[:feat, :f_out].set(w[:feat])          # rows multiplying hi
        wp = wp.at[feat_p:feat_p + feat, :f_out].set(w[feat:])  # rows for h0
    else:
        wp = jnp.zeros((feat_p, feat_p), w.dtype)
        wp = wp.at[:feat, :f_out].set(w)
    return wp


def _choose_row_tiling(n, block_rows=128):
    n_pad = _round_up(n, 8)
    if n_pad <= block_rows:
        return n_pad, n_pad
    n_pad = _round_up(n, block_rows)
    return n_pad, block_rows


# ----------------------------------------------------------------------------
# Pallas kernels
# ----------------------------------------------------------------------------
def _gcn_layer_kernel(adj_ref, x_ref, xrow_ref, h0_ref, w_ref, o_ref, *,
                      theta, alpha, variant, residual, compute_dtype):
    # one fully-fused GraphConvolution layer for a (tm, :) row panel
    hi = jnp.dot(adj_ref[...], x_ref[...],
                 preferred_element_type=jnp.float32)          # (tm, Fp) f32
    h0 = h0_ref[...].astype(jnp.float32)
    if variant:
        support = jnp.concatenate([hi, h0], axis=1)           # (tm, 2*Fp)
        r = (1.0 - alpha) * hi + alpha * h0
    else:
        support = (1.0 - alpha) * hi + alpha * h0
        r = support
    out = theta * jnp.dot(support.astype(compute_dtype), w_ref[...],
                          preferred_element_type=jnp.float32) + (1.0 - theta) * r
    if residual:
        out = out + xrow_ref[...].astype(jnp.float32)
    o_ref[...] = out.astype(o_ref.dtype)


def _gcn_stack_kernel(adj_ref, x0_ref, h0_ref, w_ref, o_ref, act_ref, *,
                      thetas, alpha, variant, residual, compute_dtype):
    # L GraphConvolution layers fused in one pallas_call; adj / h0 resident,
    # activation carried across layers in a VMEM scratch.
    layer = pl.program_id(0)

    @pl.when(layer == 0)
    def _init():
        act_ref[...] = x0_ref[...].astype(jnp.float32)

    theta = jnp.float32(thetas[0])
    for i, t in enumerate(thetas[1:], start=1):
        theta = jnp.where(layer == i, jnp.float32(t), theta)

    x = act_ref[...]                                          # (Np, Fp) f32
    hi = jnp.dot(adj_ref[...], x.astype(compute_dtype),
                 preferred_element_type=jnp.float32)
    h0 = h0_ref[...].astype(jnp.float32)
    if variant:
        support = jnp.concatenate([hi, h0], axis=1)
        r = (1.0 - alpha) * hi + alpha * h0
    else:
        support = (1.0 - alpha) * hi + alpha * h0
        r = support
    w = w_ref[0]                                              # (Win, Fp)
    out = theta * jnp.dot(support.astype(compute_dtype), w,
                          preferred_element_type=jnp.float32) + (1.0 - theta) * r
    if residual:
        out = out + x
    act_ref[...] = out

    @pl.when(layer == pl.num_programs(0) - 1)
    def _finalize():
        o_ref[...] = out.astype(o_ref.dtype)


# ----------------------------------------------------------------------------
# wrappers
# ----------------------------------------------------------------------------
def graph_convolution_pallas(x, adj, h0, weight, lamda, alpha, layer_index, *,
                             residual=False, variant=False,
                             compute_dtype=jnp.float32, block_rows=128):
    """Single GraphConvolution.forward as one fused Pallas kernel."""
    n, feat = x.shape
    theta = math.log(lamda / layer_index + 1.0)
    feat_p = _round_up(feat, 128)                  # lane-dense output
    n_pad, tm = _choose_row_tiling(n, block_rows)  # sublane / row-tile padding

    adj_p = _pad2(adj, n_pad, n_pad).astype(compute_dtype)
    x_p = _pad2(x, n_pad, feat_p).astype(compute_dtype)
    h0_p = _pad2(h0, n_pad, feat_p).astype(compute_dtype)
    w_p = _pad_weight(weight, feat, feat_p, variant).astype(compute_dtype)
    win = w_p.shape[0]
    itemsize = jnp.dtype(compute_dtype).itemsize

    kernel = functools.partial(
        _gcn_layer_kernel, theta=theta, alpha=float(alpha),
        variant=variant, residual=residual, compute_dtype=compute_dtype)

    flops = 2 * n_pad * n_pad * feat_p + 2 * n_pad * win * feat_p + 6 * n_pad * feat_p
    bytes_accessed = (adj_p.size + 2 * x_p.size + h0_p.size + w_p.size) * itemsize \
        + n_pad * feat_p * 4
    vmem_need = 2 * ((tm * n_pad + n_pad * feat_p + 2 * tm * feat_p
                      + win * feat_p) * itemsize + tm * feat_p * 4)
    vmem_limit = int(min(max(2 * vmem_need, 32 << 20), 48 << 20))

    out = pl.pallas_call(
        kernel,
        grid=(n_pad // tm,),
        in_specs=[
            pl.BlockSpec((tm, n_pad), lambda i: (i, 0)),      # adj row panel
            pl.BlockSpec((n_pad, feat_p), lambda i: (0, 0)),  # full x (resident)
            pl.BlockSpec((tm, feat_p), lambda i: (i, 0)),     # x rows (residual)
            pl.BlockSpec((tm, feat_p), lambda i: (i, 0)),     # h0 rows
            pl.BlockSpec((win, feat_p), lambda i: (0, 0)),    # weight (resident)
        ],
        out_specs=pl.BlockSpec((tm, feat_p), lambda i: (i, 0)),
        out_shape=jax.ShapeDtypeStruct((n_pad, feat_p), jnp.float32),
        compiler_params=pltpu.CompilerParams(
            dimension_semantics=("parallel",),
            vmem_limit_bytes=vmem_limit),
        cost_estimate=pl.CostEstimate(flops=int(flops), transcendentals=0,
                                      bytes_accessed=int(bytes_accessed)),
    )(adj_p, x_p, x_p, h0_p, w_p)
    return out[:n, :feat]


def graph_convolution_stack_pallas(x0, adj, h0, weights, lamda, alpha, *,
                                   residual=False, variant=False,
                                   compute_dtype=jnp.float32):
    """L stacked GraphConvolution layers fused into ONE pallas_call.

    adj and h0 are DMA'd to VMEM once and stay resident across all layers;
    the activation never round-trips HBM between layers.
    """
    n, feat = x0.shape
    num_layers = len(weights)
    thetas = [math.log(lamda / (li + 1) + 1.0) for li in range(num_layers)]
    feat_p = _round_up(feat, 128)
    n_pad = _round_up(n, 8)

    adj_p = _pad2(adj, n_pad, n_pad).astype(compute_dtype)
    x0_p = _pad2(x0, n_pad, feat_p).astype(compute_dtype)
    h0_p = _pad2(h0, n_pad, feat_p).astype(compute_dtype)
    w_p = jnp.stack([_pad_weight(w, feat, feat_p, variant) for w in weights]
                    ).astype(compute_dtype)                   # (L, Win, Fp)
    win = w_p.shape[1]
    itemsize = jnp.dtype(compute_dtype).itemsize

    kernel = functools.partial(
        _gcn_stack_kernel, thetas=thetas, alpha=float(alpha),
        variant=variant, residual=residual, compute_dtype=compute_dtype)

    flops = num_layers * (2 * n_pad * n_pad * feat_p
                          + 2 * n_pad * win * feat_p + 6 * n_pad * feat_p)
    bytes_accessed = (adj_p.size + x0_p.size + h0_p.size + w_p.size) * itemsize \
        + n_pad * feat_p * 4
    vmem_need = (adj_p.size + x0_p.size + h0_p.size) * itemsize \
        + 2 * win * feat_p * itemsize + 3 * n_pad * feat_p * 4
    vmem_limit = int(min(max(2 * vmem_need, 32 << 20), 48 << 20))

    out = pl.pallas_call(
        kernel,
        grid=(num_layers,),
        in_specs=[
            pl.BlockSpec((n_pad, n_pad), lambda l: (0, 0)),   # adj (resident)
            pl.BlockSpec((n_pad, feat_p), lambda l: (0, 0)),  # x0  (resident)
            pl.BlockSpec((n_pad, feat_p), lambda l: (0, 0)),  # h0  (resident)
            pl.BlockSpec((1, win, feat_p), lambda l: (l, 0, 0)),  # per-layer W
        ],
        out_specs=pl.BlockSpec((n_pad, feat_p), lambda l: (0, 0)),
        out_shape=jax.ShapeDtypeStruct((n_pad, feat_p), jnp.float32),
        scratch_shapes=[pltpu.VMEM((n_pad, feat_p), jnp.float32)],
        compiler_params=pltpu.CompilerParams(
            dimension_semantics=("arbitrary",),
            vmem_limit_bytes=vmem_limit),
        cost_estimate=pl.CostEstimate(flops=int(flops), transcendentals=0,
                                      bytes_accessed=int(bytes_accessed)),
    )(adj_p, x0_p, h0_p, w_p)
    return out[:n, :feat]


# ----------------------------------------------------------------------------
# pure-JAX reference (mirrors the PyTorch module)
# ----------------------------------------------------------------------------
def graph_convolution_ref(x, adj, h0, weight, lamda, alpha, layer_index,
                          residual=False, variant=False):
    theta = math.log(lamda / layer_index + 1.0)
    hi = adj @ x                                   # TODO(synk): torch.spmm is sparse; densified here
    if variant:
        support = jnp.concatenate([hi, h0], axis=1)
        r = (1.0 - alpha) * hi + alpha * h0
    else:
        support = (1.0 - alpha) * hi + alpha * h0
        r = support
    out = theta * (support @ weight) + (1.0 - theta) * r
    if residual:
        out = out + x
    return out


def _check(got, want, tol):
    got = jax.block_until_ready(got)
    assert got.shape == want.shape, (got.shape, want.shape)
    assert bool(jnp.all(jnp.isfinite(got)))
    err = float(jnp.max(jnp.abs(got - want)))
    assert err <= tol, f"max abs err {err} > {tol}"


# ----------------------------------------------------------------------------
# demo
# ----------------------------------------------------------------------------
if __name__ == "__main__":
    N, F, L = 48, 32, 4              # nodes, hidden features, stacked layers
    lamda, alpha = 0.5, 0.1

    key = jax.random.PRNGKey(0)
    k_adj, k_x, k_h0, k_w = jax.random.split(key, 4)

    # random symmetric normalized adjacency with self-loops (what spmm sees)
    mask = (jax.random.uniform(k_adj, (N, N)) < 0.15).astype(jnp.float32)
    a = jnp.maximum(mask, mask.T) + jnp.eye(N, dtype=jnp.float32)
    dinv = 1.0 / jnp.sqrt(a.sum(axis=1))
    adj = a * dinv[:, None] * dinv[None, :]

    x = jax.random.normal(k_x, (N, F), jnp.float32)
    h0 = jax.random.normal(k_h0, (N, F), jnp.float32)

    stdv = 1.0 / math.sqrt(F)
    wkeys = jax.random.split(k_w, L + 1)
    weights = [jax.random.uniform(wkeys[i], (F, F), jnp.float32, -stdv, stdv)
               for i in range(L)]
    w_variant = jax.random.uniform(wkeys[L], (2 * F, F), jnp.float32, -stdv, stdv)

    # 1) single layer, default flags (variant=False, residual=False), f32
    out1 = graph_convolution_pallas(x, adj, h0, weights[0], lamda, alpha, 1)
    ref1 = graph_convolution_ref(x, adj, h0, weights[0], lamda, alpha, 1)
    _check(out1, ref1, 3e-2)

    # 2) single layer, variant=True, residual=True, f32
    out2 = graph_convolution_pallas(x, adj, h0, w_variant, lamda, alpha, 2,
                                    residual=True, variant=True)
    ref2 = graph_convolution_ref(x, adj, h0, w_variant, lamda, alpha, 2,
                                 residual=True, variant=True)
    _check(out2, ref2, 3e-2)

    # 3) fused L-layer stack (adj/h0 resident in VMEM across layers), f32
    out3 = graph_convolution_stack_pallas(x, adj, h0, weights, lamda, alpha)
    ref3 = x
    for li in range(L):
        ref3 = graph_convolution_ref(ref3, adj, h0, weights[li],
                                     lamda, alpha, li + 1)
    _check(out3, ref3, 3e-2)

    # 4) same fused stack with bf16 operator/weight storage (f32 MXU accum)
    out4 = graph_convolution_stack_pallas(x, adj, h0, weights, lamda, alpha,
                                          compute_dtype=jnp.bfloat16)
    _check(out4, ref3, 1.5e-1)

    print("KERNEL_OK")
</pallas_src>

<mosaic_0001>
module attributes {stable_mosaic.version = 11 : i64} {
  func.func @_gcn_layer_kernel(%arg0: i32, %arg1: memref<48x48xf32, #tpu.memory_space<vmem>>, %arg2: memref<48x128xf32, #tpu.memory_space<vmem>>, %arg3: memref<48x128xf32, #tpu.memory_space<vmem>>, %arg4: memref<48x128xf32, #tpu.memory_space<vmem>>, %arg5: memref<128x128xf32, #tpu.memory_space<vmem>>, %arg6: memref<48x128xf32, #tpu.memory_space<vmem>>) attributes {dimension_semantics = [#tpu.dimension_semantics<parallel>], iteration_bounds = array<i64: 1>, scalar_prefetch = 0 : i64, scratch_operands = 0 : i64, tpu.core_type = #tpu.core_type<tc>, window_params = [{transform_indices = @transform_0, window_bounds = array<i64: 48, 48>}, {pipeline_mode = #tpu.pipeline_mode<synchronous>, transform_indices = @transform_1, window_bounds = array<i64: 48, 128>}, {transform_indices = @transform_2, window_bounds = array<i64: 48, 128>}, {transform_indices = @transform_3, window_bounds = array<i64: 48, 128>}, {pipeline_mode = #tpu.pipeline_mode<synchronous>, transform_indices = @transform_4, window_bounds = array<i64: 128, 128>}, {transform_indices = @transform_5, window_bounds = array<i64: 48, 128>}]} {
    %c0 = arith.constant 0 : index
    %c0_0 = arith.constant 0 : index
    %0 = vector.load %arg1[%c0, %c0_0] : memref<48x48xf32, #tpu.memory_space<vmem>>, vector<48x48xf32>
    %c0_1 = arith.constant 0 : index
    %c0_2 = arith.constant 0 : index
    %1 = vector.load %arg2[%c0_1, %c0_2] : memref<48x128xf32, #tpu.memory_space<vmem>>, vector<48x128xf32>
    %cst = arith.constant dense<0.000000e+00> : vector<48x128xf32>
    %2 = tpu.matmul %0, %1, %cst {dimension_numbers = #tpu.dot_dimension_numbers<[1], [0], [0], [1], [0, 0, 1, 1], [], []>} : vector<48x48xf32>, vector<48x128xf32>, vector<48x128xf32> -> vector<48x128xf32>
    %c0_3 = arith.constant 0 : index
    %c0_4 = arith.constant 0 : index
    %3 = vector.load %arg4[%c0_3, %c0_4] : memref<48x128xf32, #tpu.memory_space<vmem>>, vector<48x128xf32>
    %cst_5 = arith.constant 0.899999976 : f32
    %4 = vector.broadcast %cst_5 : f32 to vector<48x128xf32>
    %5 = arith.mulf %4, %2 : vector<48x128xf32>
    %cst_6 = arith.constant 1.000000e-01 : f32
    %6 = vector.broadcast %cst_6 : f32 to vector<48x128xf32>
    %7 = arith.mulf %6, %3 : vector<48x128xf32>
    %8 = arith.addf %5, %7 : vector<48x128xf32>
    %c0_7 = arith.constant 0 : index
    %c0_8 = arith.constant 0 : index
    %9 = vector.load %arg5[%c0_7, %c0_8] : memref<128x128xf32, #tpu.memory_space<vmem>>, vector<128x128xf32>
    %cst_9 = arith.constant dense<0.000000e+00> : vector<48x128xf32>
    %10 = tpu.matmul %8, %9, %cst_9 {dimension_numbers = #tpu.dot_dimension_numbers<[1], [0], [0], [1], [0, 0, 1, 1], [], []>} : vector<48x128xf32>, vector<128x128xf32>, vector<48x128xf32> -> vector<48x128xf32>
    %cst_10 = arith.constant 0.405465096 : f32
    %11 = vector.broadcast %cst_10 : f32 to vector<48x128xf32>
    %12 = arith.mulf %11, %10 : vector<48x128xf32>
    %cst_11 = arith.constant 0.594534874 : f32
    %13 = vector.broadcast %cst_11 : f32 to vector<48x128xf32>
    %14 = arith.mulf %13, %8 : vector<48x128xf32>
    %15 = arith.addf %12, %14 : vector<48x128xf32>
    %c0_12 = arith.constant 0 : index
    %c0_13 = arith.constant 0 : index
    %16 = vector.load %arg6[%c0_12, %c0_13] : memref<48x128xf32, #tpu.memory_space<vmem>>, vector<48x128xf32>
    tpu.vector_store %arg6[%c0_12, %c0_13], %15 {strides = array<i32>} : memref<48x128xf32, #tpu.memory_space<vmem>>, vector<48x128xf32>,
    return
  }
  func.func @transform_0(%arg0: i32) -> (i32, i32) {
    %c0_i32 = arith.constant 0 : i32
    %c0_i32_0 = arith.constant 0 : i32
    return %arg0, %c0_i32 : i32, i32
  }
  func.func @transform_1(%arg0: i32) -> (i32, i32) {
    %c0_i32 = arith.constant 0 : i32
    %c0_i32_0 = arith.constant 0 : i32
    %c0_i32_1 = arith.constant 0 : i32
    return %c0_i32, %c0_i32_0 : i32, i32
  }
  func.func @transform_2(%arg0: i32) -> (i32, i32) {
    %c0_i32 = arith.constant 0 : i32
    %c0_i32_0 = arith.constant 0 : i32
    return %arg0, %c0_i32 : i32, i32
  }
  func.func @transform_3(%arg0: i32) -> (i32, i32) {
    %c0_i32 = arith.constant 0 : i32
    %c0_i32_0 = arith.constant 0 : i32
    return %arg0, %c0_i32 : i32, i32
  }
  func.func @transform_4(%arg0: i32) -> (i32, i32) {
    %c0_i32 = arith.constant 0 : i32
    %c0_i32_0 = arith.constant 0 : i32
    %c0_i32_1 = arith.constant 0 : i32
    return %c0_i32, %c0_i32_0 : i32, i32
  }
  func.func @transform_5(%arg0: i32) -> (i32, i32) {
    %c0_i32 = arith.constant 0 : i32
    %c0_i32_0 = arith.constant 0 : i32
    return %arg0, %c0_i32 : i32, i32
  }
}

</mosaic_0001>

<bundles_post_ra>
// kernel: tpu_custom_call.1
= control target key start
LH: loop header
LB: loop body
LE: loop exit
PB: predicated region body
PF: predicated region fallthrough
CT: control target
= control target key end

     0   :  { %10 = vsyncpa [#allocation3], 0  ;;  %s835_s0 = inlined_call_operand.hbm [shape: f32[48,48], index: 0, kind: input, shape index: {}]   ;;  %s836_s1 = inlined_call_operand.hbm [shape: f32[48,128], index: 1, kind: input, shape index: {}]   ;;  %s837_s2 = inlined_call_operand.hbm [shape: f32[48,128], index: 2, kind: input, shape index: {}]   ;;  %s838_s3 = inlined_call_operand.hbm [shape: f32[48,128], index: 3, kind: input, shape index: {}]   ;;  %s839_s4 = inlined_call_operand.hbm [shape: f32[128,128], index: 4, kind: input, shape index: {}]   ;;  %s840_s5 = inlined_call_operand.hbm [shape: f32[48,128], index: 5, kind: output, shape index: {}]  }
   0x1   :  { %11 = vsyncpa [#allocation6], 0 }
   0x2   :  { %12 = vsyncpa [#allocation9], 0 }
   0x3   :  { %13 = vsyncpa [#allocation4], 0  ;;  %s687_s18 = smov [#allocation5]   ;;  %s688_s20 = smov [#allocation8]  }
   0x4   :  { %s31_s19 = sshll.u32 %s687_s18, 4  ;;  %s55_s21 = sshll.u32 %s688_s20, 4  ;;  %s32_s19 = int_to_ptr.vmem [resolvable:$true] %s31_s19  ;;  %s725_s21 = int_to_ptr.vmem [resolvable:$true] %s55_s21 }
   0x5   :  { %s547_s24 = scalar_lea.hbm %s836_s1, 768 }
   0x6   :  { %p548_p0 = scmp.ne.s32.totalorder %s836_s1, %s547_s24  ;;  %p551_p1 = scmp.lt.u32.totalorder %s547_s24, %s836_s1 }
   0x8   :  { %p553_p2 = pnand %p551_p1, %p548_p0 }
   0xa   :  { %556 = shalt.err (!%p553_p2)
}
   0xb   :  { %s557_s29 = scalar_lea.vmem %s32_s19, 768  ;;  %p562_p4 = scmp.lt.s32.totalorder %s32_s19, %s32_s19 }
   0xc   :  { %p558_p3 = scmp.ne.s32.totalorder %s32_s19, %s557_s29  ;;  %p563_p5 = scmp.lt.s32.totalorder %s557_s29, %s557_s29 }
   0xe   :  { %p564_p6 = por %p563_p5, %p562_p4 }
  0x10   :  { %p565_p7 = pnand %p564_p6, %p558_p3 }
  0x12   :  { %568 = shalt.err (!%p565_p7)
}
  0x13   :  { %s689_s30 = smov 128   ;;  %s690_s6 = smov 8  }
  0x14   :  { %37 = dma.hbm_to_vmem [thread:$0]  %s836_s1, 768, %s32_s19, [#allocation6], %s689_s30, %s689_s30, %s690_s6  }
  0x15   :  { %s569_s11 = scalar_lea.hbm %s838_s3, 768 }
  0x16   :  { %p570_p8 = scmp.ne.s32.totalorder %s838_s3, %s569_s11  ;;  %p573_p9 = scmp.lt.u32.totalorder %s569_s11, %s838_s3 }
  0x18   :  { %p575_p10 = pnand %p573_p9, %p570_p8 }
  0x1a   :  { %578 = shalt.err (!%p575_p10)
}
  0x1b   :  { %s579_s16 = scalar_lea.vmem %s725_s21, 768  ;;  %p584_p12 = scmp.lt.s32.totalorder %s725_s21, %s725_s21 }
  0x1c   :  { %p580_p11 = scmp.ne.s32.totalorder %s725_s21, %s579_s16  ;;  %p585_p13 = scmp.lt.s32.totalorder %s579_s16, %s579_s16 }
  0x1e   :  { %p586_p0 = por %p585_p13, %p584_p12 }
  0x20   :  { %p587_p1 = pnand %p586_p0, %p580_p11 }
  0x22   :  { %590 = shalt.err (!%p587_p1)
}
  0x23   :  { %61 = dma.hbm_to_vmem [thread:$0]  %s838_s3, 768, %s725_s21, [#allocation9], %s689_s30, %s689_s30, %s690_s6  }
  0x24   :  { %s691_s18 = smov [#allocation2]   ;;  %s692_s20 = smov [#allocation7]  }
  0x25   :  { %s19_s19 = sshll.u32 %s691_s18, 4  ;;  %s43_s22 = sshll.u32 %s692_s20, 4  ;;  %s20_s19 = int_to_ptr.vmem [resolvable:$true] %s19_s19  ;;  %s762_s22 = int_to_ptr.vmem [resolvable:$true] %s43_s22 }
  0x26   :  { %s591_s25 = scalar_lea.hbm %s835_s0, 768 }
  0x27   :  { %p592_p2 = scmp.ne.s32.totalorder %s835_s0, %s591_s25  ;;  %p595_p3 = scmp.lt.u32.totalorder %s591_s25, %s835_s0 }
  0x29   :  { %p597_p4 = pnand %p595_p3, %p592_p2 }
  0x2b   :  { %600 = shalt.err (!%p597_p4)
}
  0x2c   :  { %s601_s3 = scalar_lea.vmem %s20_s19, 768  ;;  %p606_p6 = scmp.lt.s32.totalorder %s20_s19, %s20_s19 }
  0x2d   :  { %p602_p5 = scmp.ne.s32.totalorder %s20_s19, %s601_s3  ;;  %p607_p7 = scmp.lt.s32.totalorder %s601_s3, %s601_s3 }
  0x2f   :  { %p608_p8 = por %p607_p7, %p606_p6 }
  0x31   :  { %p609_p9 = pnand %p608_p8, %p602_p5 }
  0x33   :  { %612 = shalt.err (!%p609_p9)
}
  0x34   :  { %25 = dma.hbm_to_vmem [thread:$0]  %s835_s0, 768, %s20_s19, [#allocation3], %s689_s30, %s689_s30, %s690_s6  }
  0x35   :  { %s613_s10 = scalar_lea.hbm %s837_s2, 768 }
  0x36   :  { %p614_p10 = scmp.ne.s32.totalorder %s837_s2, %s613_s10  ;;  %p617_p11 = scmp.lt.u32.totalorder %s613_s10, %s837_s2 }
  0x38   :  { %p619_p12 = pnand %p617_p11, %p614_p10 }
  0x3a   :  { %622 = shalt.err (!%p619_p12)
}
  0x3b   :  { %s623_s15 = scalar_lea.vmem %s762_s22, 768  ;;  %p628_p0 = scmp.lt.s32.totalorder %s762_s22, %s762_s22 }
  0x3c   :  { %p624_p13 = scmp.ne.s32.totalorder %s762_s22, %s623_s15  ;;  %p629_p1 = scmp.lt.s32.totalorder %s623_s15, %s623_s15 }
  0x3e   :  { %p630_p2 = por %p629_p1, %p628_p0 }
  0x40   :  { %p631_p3 = pnand %p630_p2, %p624_p13 }
  0x42   :  { %634 = shalt.err (!%p631_p3)
}
  0x43   :  { %49 = dma.hbm_to_vmem [thread:$0]  %s837_s2, 768, %s762_s22, [#allocation6], %s689_s30, %s689_s30, %s690_s6  }
  0x44   :  { %s693_s1 = smov [#allocation10]   ;;  %s635_s20 = scalar_lea.hbm %s839_s4, 2048 }
  0x45   :  { %s67_s17 = sshll.u32 %s693_s1, 4  ;;  %p636_p4 = scmp.ne.s32.totalorder %s839_s4, %s635_s20  ;;  %s68_s17 = int_to_ptr.vmem [resolvable:$true] %s67_s17 }
  0x46   :  { %p639_p5 = scmp.lt.u32.totalorder %s635_s20, %s839_s4 }
  0x48   :  { %p641_p6 = pnand %p639_p5, %p636_p4 }
  0x4a   :  { %644 = shalt.err (!%p641_p6)
}
  0x4b   :  { %s645_s27 = scalar_lea.vmem %s68_s17, 2048  ;;  %p650_p8 = scmp.lt.s32.totalorder %s68_s17, %s68_s17 }
  0x4c   :  { %p646_p7 = scmp.ne.s32.totalorder %s68_s17, %s645_s27  ;;  %p651_p9 = scmp.lt.s32.totalorder %s645_s27, %s645_s27 }
  0x4e   :  { %p652_p10 = por %p651_p9, %p650_p8 }
  0x50   :  { %p653_p11 = pnand %p652_p10, %p646_p7 }
  0x52   :  { %656 = shalt.err (!%p653_p11)
}
  0x53   :  { %73 = dma.hbm_to_vmem [thread:$0]  %s839_s4, 2048, %s68_s17, [#allocation9], %s689_s30, %s689_s30, %s690_s6  }
  0x54   :  { %679 = dma.done.wait [#allocation3], 768  }
  0x55   :  { %680 = vsyncadd [#allocation3], 4294966528 }
  0x56   :  { %681 = dma.done.wait [#allocation6], 1536  }
  0x57   :  { %682 = vsyncadd [#allocation6], 4294965760 }
  0x58   :  { %683 = dma.done.wait [#allocation9], 2816  }
  0x59   :  { %684 = vsyncadd [#allocation9], 4294964480  ;;  %v95_v0 = vld [vmem:[#allocation5] sm:$0xff]  ;;  %v96_v1 = vld [vmem:[#allocation5 + $0x8] sm:$0xff]  ;;  %vm101_vm0 = vcmask 392192   ;;  %s694_s4 = smov [#allocation11]  }
  0x5a   :  { %v97_v2 = vld [vmem:[#allocation5 + $0x10] sm:$0xff]  ;;  %v495_v3 = vpack.c.bf16 %v96_v1, %v95_v0  ;;  %v98_v4 = vld [vmem:[#allocation5 + $0x18] sm:$0xff]  ;;  %v99_v6 = vld [vmem:[#allocation5 + $0x20] sm:$0xff]  ;;  %s379_s28 = sshll.u32 %s694_s4, 4  ;;  %s380_s28 = int_to_ptr.vmem [resolvable:$true] %s379_s28 }
  0x5b   :  { %v499_v5 = vpack.c.bf16 %v98_v4, %v97_v2  ;;  %v100_v7 = vld [vmem:[#allocation5 + $0x28] sm:$0xff]  ;;  %v89_v8 = vld [vmem:[#allocation2] sm:$0xff]  ;;  %v240_v10 = vld [vmem:[#allocation10 + $0x8] sm:$0xff]  ;;  %s657_s29 = scalar_lea.vmem %s380_s28, 768  ;;  %p662_p13 = scmp.lt.s32.totalorder %s380_s28, %s380_s28 }
  0x5c   :  { %496 = vmatprep.subr.bf16.mxu0 %v495_v3  ;;  %445 = vmatprep.mubr.msk.f32.mxu0 %vm101_vm0, %v89_v8  ;;  %v239_v9 = vld [vmem:[#allocation10] sm:$0xff]  ;;  %v241_v11 = vld [vmem:[#allocation10 + $0x10] sm:$0xff]  ;;  %v503_v12 = vpack.c.bf16 %v100_v7, %v99_v6  ;;  %v242_v14 = vld [vmem:[#allocation10 + $0x18] sm:$0xff]  ;;  %p658_p12 = scmp.ne.s32.totalorder %s380_s28, %s657_s29  ;;  %p663_p0 = scmp.lt.s32.totalorder %s657_s29, %s657_s29 }
  0x5d   :  { %498 = vmatpush3.bf16.msra.mxu0 %v495_v3  ;;  %v507_v13 = vpack.c.bf16 %v240_v10, %v239_v9  ;;  %v511_v15 = vpack.c.bf16 %v242_v14, %v241_v11  ;;  %v243_v16 = vld [vmem:[#allocation10 + $0x20] sm:$0xff]  ;;  %v244_v17 = vld [vmem:[#allocation10 + $0x28] sm:$0xff]  ;;  %v245_v19 = vld [vmem:[#allocation10 + $0x30] sm:$0xff] }
  0x5e   :  { %500 = vmatprep.subr.bf16.mxu0 %v499_v5  ;;  %v515_v18 = vpack.c.bf16 %v244_v17, %v243_v16  ;;  %v246_v20 = vld [vmem:[#allocation10 + $0x38] sm:$0xff]  ;;  %v90_v21 = vld [vmem:[#allocation2 + $0x8] sm:$0xff]  ;;  %v91_v22 = vld [vmem:[#allocation2 + $0x10] sm:$0xff]  ;;  %p664_p1 = por %p663_p0, %p662_p13 }
  0x5f   :  { %508 = vmatprep.subr.bf16.mxu1 %v507_v13  ;;  %v519_v23 = vpack.c.bf16 %v246_v20, %v245_v19  ;;  %v247_v24 = vld [vmem:[#allocation10 + $0x40] sm:$0xff]  ;;  %v248_v25 = vld [vmem:[#allocation10 + $0x48] sm:$0xff]  ;;  %v92_v26 = vld [vmem:[#allocation2 + $0x18] sm:$0xff] }
  0x60   :  { %510 = vmatpush3.bf16.msra.mxu1 %v507_v13  ;;  %v93_v27 = vld [vmem:[#allocation2 + $0x20] sm:$0xff]  ;;  %v523_v28 = vpack.c.bf16 %v248_v25, %v247_v24  ;;  %v249_v29 = vld [vmem:[#allocation10 + $0x50] sm:$0xff]  ;;  %v250_v30 = vld [vmem:[#allocation10 + $0x58] sm:$0xff]  ;;  %p665_p2 = pnand %p664_p1, %p658_p12 }
  0x61   :  { %502 = vmatpush3.bf16.msra.mxu0 %v499_v5  ;;  %512 = vmatprep.subr.bf16.mxu1 %v511_v15  ;;  %v94_v31 = vld [vmem:[#allocation2 + $0x28] sm:$0xff]  ;;  %v527_v32 = vpack.c.bf16 %v250_v30, %v249_v29  ;;  %v251_v33 = vld [vmem:[#allocation10 + $0x60] sm:$0xff]  ;;  %v253_v36 = vld [vmem:[#allocation10 + $0x70] sm:$0xff] }
  0x62   :  { %504 = vmatprep.subr.bf16.mxu0 %v503_v12  ;;  %v252_v34 = vld [vmem:[#allocation10 + $0x68] sm:$0xff]  ;;  %v254_v37 = vld [vmem:[#allocation10 + $0x78] sm:$0xff]  ;;  %v215_v39 = vld [vmem:[#allocation8] sm:$0xff] }
  0x63   :  { %v531_v35 = vpack.c.bf16 %v252_v34, %v251_v33  ;;  %v535_v38 = vpack.c.bf16 %v254_v37, %v253_v36  ;;  %v216_v40 = vld [vmem:[#allocation8 + $0x8] sm:$0xff]  ;;  %v227_v42 = vmul.f32 0.1, %v215_v39  ;;  %v217_v46 = vld [vmem:[#allocation8 + $0x10] sm:$0xff]  ;;  %v218_v48 = vld [vmem:[#allocation8 + $0x18] sm:$0xff] }
  0x64   :  { %514 = vmatpush3.bf16.msra.mxu1 %v511_v15  ;;  %v228_v44 = vmul.f32 0.1, %v216_v40  ;;  %v229_v50 = vmul.f32 0.1, %v217_v46  ;;  %v230_v54 = vmul.f32 0.1, %v218_v48 }
  0x65   :  { %506 = vmatpush3.bf16.msra.mxu0 %v503_v12  ;;  %516 = vmatprep.subr.bf16.mxu1 %v515_v18  ;;  %v219_v56 = vld [vmem:[#allocation8 + $0x20] sm:$0xff]  ;;  %v220_v58 = vld [vmem:[#allocation8 + $0x28] sm:$0xff] }
  0x66   :  { %v231_v61 = vmul.f32 0.1, %v219_v56  ;;  %v232_v0 = vmul.f32 0.1, %v220_v58 }
  0x68   :  { %446 = vmatmul.mubr.msk.f32.vlgmr.msra.gmra.mrb[0].mxu0 %vm101_vm0, %v90_v21  ;;  %518 = vmatpush3.bf16.msra.mxu1 %v515_v18 }
  0x69   :  { %448 = vmatprep.mubr.msk.f32.mxu0 %vm101_vm0, %v91_v22  ;;  %520 = vmatprep.subr.bf16.mxu1 %v519_v23 }
  0x6c   :  { %449 = vmatmul.mubr.msk.f32.gmra.mrb[2].mxu0 %vm101_vm0, %v92_v26  ;;  %522 = vmatpush3.bf16.msra.mxu1 %v519_v23 }
  0x6d   :  { %451 = vmatprep.mubr.msk.f32.mxu0 %vm101_vm0, %v93_v27  ;;  %524 = vmatprep.subr.bf16.mxu1 %v523_v28 }
  0x70   :  { %452 = vmatmul.mubr.msk.f32.gmra.mrb[4].mxu0 %vm101_vm0, %v94_v31  ;;  %526 = vmatpush3.bf16.msra.mxu1 %v523_v28 }
  0x71   :  { %528 = vmatprep.subr.bf16.mxu1 %v527_v32 }
  0x74   :  { %530 = vmatpush3.bf16.msra.mxu1 %v527_v32 }
  0x75   :  { %532 = vmatprep.subr.bf16.mxu1 %v531_v35 }
  0x78   :  { %534 = vmatpush3.bf16.msra.mxu1 %v531_v35 }
  0x79   :  { %536 = vmatprep.subr.bf16.mxu1 %v535_v38 }
  0x7c   :  { %538 = vmatpush3.bf16.msra.mxu1 %v535_v38 }
 0x13b   :  { %v447_v41 = vpop.f32.mrb[0].mxu0 }
 0x13c   :  { %v222_v43 = vmul.f32 0.9, %v447_v41  ;;  %v186_v45 = vpop.f32.mrb[1].mxu0 }
 0x13d   :  { %v221_v47 = vmul.f32 0.9, %v186_v45 }
 0x13e   :  { %v234_v52 = vadd.f32 %v228_v44, %v222_v43 }
 0x13f   :  { %v450_v49 = vpop.f32.mrb[2].mxu0  ;;  %v233_v51 = vadd.f32 %v227_v42, %v221_v47 }
 0x140   :  { %v224_v53 = vmul.f32 0.9, %v450_v49  ;;  %v196_v55 = vpop.f32.mrb[3].mxu0  ;;  %v357_v7 = vmul.f32 0.5945349, %v234_v52 }
 0x141   :  { %v223_v57 = vmul.f32 0.9, %v196_v55  ;;  %486 = vmatprep.mubr.f32.mxu1 %v233_v51  ;;  %v356_v9 = vmul.f32 0.5945349, %v233_v51 }
 0x142   :  { %487 = vmatmul.mubr.f32.vlgmr.msra.gmra.mrb[0].mxu1 %v234_v52  ;;  %v236_v62 = vadd.f32 %v230_v54, %v224_v53 }
 0x143   :  { %v235_v59 = vadd.f32 %v229_v50, %v223_v57  ;;  %v453_v60 = vpop.f32.mrb[4].mxu0 }
 0x144   :  { %v226_v63 = vmul.f32 0.9, %v453_v60  ;;  %v206_v1 = vpop.f32.mrb[5].mxu0  ;;  %v359_v15 = vmul.f32 0.5945349, %v236_v62 }
 0x145   :  { %v225_v2 = vmul.f32 0.9, %v206_v1  ;;  %489 = vmatprep.mubr.f32.mxu1 %v235_v59  ;;  %v358_v18 = vmul.f32 0.5945349, %v235_v59 }
 0x146   :  { %490 = vmatmul.mubr.f32.gmra.mrb[2].mxu1 %v236_v62  ;;  %v238_v4 = vadd.f32 %v232_v0, %v226_v63 }
 0x147   :  { %v237_v3 = vadd.f32 %v231_v61, %v225_v2 }
 0x148   :  { %v361_v23 = vmul.f32 0.5945349, %v238_v4 }
 0x149   :  { %492 = vmatprep.mubr.f32.mxu1 %v237_v3  ;;  %v360_v26 = vmul.f32 0.5945349, %v237_v3 }
 0x14a   :  { %493 = vmatmul.mubr.f32.gmra.mrb[4].mxu1 %v238_v4 }
 0x215   :  { %v488_v5 = vpop.f32.mrb[0].mxu1 }
 0x216   :  { %v351_v6 = vmul.f32 0.4054651, %v488_v5  ;;  %v321_v8 = vpop.f32.mrb[1].mxu1 }
 0x217   :  { %v350_v10 = vmul.f32 0.4054651, %v321_v8 }
 0x218   :  { %v363_v11 = vadd.f32 %v357_v7, %v351_v6 }
 0x219   :  { %v362_v12 = vadd.f32 %v356_v9, %v350_v10  ;;  %v491_v13 = vpop.f32.mrb[2].mxu1 }
 0x21a   :  { %369 = vst [vmem:[#allocation11 + $0x8] sm:$0xff] %v363_v11  ;;  %v353_v14 = vmul.f32 0.4054651, %v491_v13  ;;  %v331_v16 = vpop.f32.mrb[3].mxu1 }
 0x21b   :  { %368 = vst [vmem:[#allocation11] sm:$0xff] %v362_v12  ;;  %v352_v17 = vmul.f32 0.4054651, %v331_v16 }
 0x21c   :  { %v365_v19 = vadd.f32 %v359_v15, %v353_v14 }
 0x21d   :  { %v364_v20 = vadd.f32 %v358_v18, %v352_v17  ;;  %v494_v21 = vpop.f32.mrb[4].mxu1 }
 0x21e   :  { %371 = vst [vmem:[#allocation11 + $0x18] sm:$0xff] %v365_v19  ;;  %v355_v22 = vmul.f32 0.4054651, %v494_v21  ;;  %v341_v24 = vpop.f32.mrb[5].mxu1 }
 0x21f   :  { %370 = vst [vmem:[#allocation11 + $0x10] sm:$0xff] %v364_v20  ;;  %v354_v25 = vmul.f32 0.4054651, %v341_v24 }
 0x220   :  { %v367_v27 = vadd.f32 %v361_v23, %v355_v22 }
 0x221   :  { %v366_v28 = vadd.f32 %v360_v26, %v354_v25 }
 0x222   :  { %373 = vst [vmem:[#allocation11 + $0x28] sm:$0xff] %v367_v27 }
 0x223   :  { %372 = vst [vmem:[#allocation11 + $0x20] sm:$0xff] %v366_v28 }
 0x224   :  { %668 = shalt.err (!%p665_p2)
}
 0x225   :  { %s669_s7 = scalar_lea.hbm %s840_s5, 768 }
 0x226   :  { %p670_p3 = scmp.ne.s32.totalorder %s840_s5, %s669_s7  ;;  %p673_p4 = scmp.lt.u32.totalorder %s669_s7, %s840_s5 }
 0x228   :  { %p675_p5 = pnand %p673_p4, %p670_p3 }
 0x22a   :  { %678 = shalt.err (!%p675_p5)
}
 0x22b   :  { %385 = dma.vmem_to_hbm [thread:$0]  %s380_s28, 768, %s840_s5, [#allocation4], %s689_s30, %s689_s30, %s690_s6  }
 0x22c   :  { %685 = dma.done.wait [#allocation4], 768  }
 0x22d   :  { %686 = vsyncadd [#allocation4], 4294966528 }
 0x22e   :  { %389 = vsyncpa [#allocation3], 1 }
 0x22f   :  { %390 = vsyncpa [#allocation6], 1 }
 0x230   :  { %391 = vsyncpa [#allocation9], 1 }
 0x231   :  { %392 = vsyncpa [#allocation4], 1 }

</bundles_post_ra>
